<compile_context>
chip_gen: v5e
topology: v5e:2x2
jax: 0.10.0
libtpu: 0.0.40
codegen_flags: <defaults>
</compile_context>

<pallas_src>
import functools

import jax
import jax.numpy as jnp
from jax.experimental import pallas as pl
from jax.experimental.pallas import tpu as pltpu


def _round_up(n, m):
    return ((n + m - 1) // m) * m


def _highway_kernel(x_ref, wp_ref, wg_ref, bp_ref, bg_ref, o_ref, *, tn, mm_dtype):
    x = x_ref[...]                                           # (tm, D)
    xm = x if x.dtype == mm_dtype else x.astype(mm_dtype)
    wp = wp_ref[...]                                         # (D, tn)
    wg = wg_ref[...]
    if wp.dtype != mm_dtype:
        wp = wp.astype(mm_dtype)
        wg = wg.astype(mm_dtype)
    # Two back-to-back MXU matmuls with f32 accumulation.
    yp = jnp.dot(xm, wp, preferred_element_type=jnp.float32) + bp_ref[...].astype(jnp.float32)
    yg = jnp.dot(xm, wg, preferred_element_type=jnp.float32) + bg_ref[...].astype(jnp.float32)
    proj = jnp.maximum(yp, 0.0)                              # relu    (VPU)
    gate = jax.nn.sigmoid(yg)                                # sigmoid (EUP)
    if tn == x.shape[-1]:
        xr = x.astype(jnp.float32)                           # single column tile
    else:
        j = pl.program_id(1)
        start = pl.multiple_of(j * tn, 128)                  # tn is 128-aligned here
        xr = x_ref[:, pl.ds(start, tn)].astype(jnp.float32)
    # proj*gate + (1-gate)*x  ==  gate*(proj - x) + x   (one fewer multiply)
    o_ref[...] = (gate * (proj - xr) + xr).astype(o_ref.dtype)


def highway(x, w_proj, b_proj, w_gate, b_gate, *,
            tm_max=512, matmul_dtype=jnp.bfloat16, out_dtype=None):
    """Highway forward.

    x: (B, D); w_*: (D, D) stored as (in, out) (transposed vs torch's (out, in));
    b_*: (D,).  matmul_dtype: MXU operand dtype (bf16 default; use jnp.float32
    for exact numerics).  out_dtype: output dtype (defaults to x.dtype; bf16
    halves HBM writeback on v5e/v6e when the kernel is memory-bound).
    Best perf: store weights in bf16 at parameter setup so no in-kernel cast
    and half the VMEM residency are needed.
    """
    B, D = x.shape
    assert w_proj.shape == (D, D) and w_gate.shape == (D, D)
    out_dtype = x.dtype if out_dtype is None else jnp.dtype(out_dtype)
    mm_dtype = jnp.dtype(matmul_dtype)

    xi = jnp.dtype(x.dtype).itemsize
    wi = jnp.dtype(w_proj.dtype).itemsize
    oi = jnp.dtype(out_dtype).itemsize

    # ---- batch tile -------------------------------------------------------
    if B <= 256:
        tm = B                      # one full-array tile (full-dim block is always legal)
    else:
        tm_cap = max(256, (int(tm_max) // 256) * 256)
        # >= 2 grid steps so a 2-TC chip (v7x) can shard the parallel batch
        # axis; 256-row alignment keeps MXU passes full and stores unmasked.
        tm = min(tm_cap, _round_up(pl.cdiv(B, 2), 256))
    num_m = pl.cdiv(B, tm)

    # ---- VMEM budget & output-column tile ---------------------------------
    try:
        vmem_cap = int(pltpu.get_tpu_info().vmem_capacity_bytes)
    except Exception:
        vmem_cap = 64 << 20         # conservative: v7x per-TensorCore VMEM
    budget = int(vmem_cap * 0.8)    # headroom for compiler scratch

    def _vmem_est(tn_, w_bufs):
        return (2 * tm * D * xi                 # x tile (double-buffered)
                + w_bufs * 2 * D * tn_ * wi     # W_proj + W_gate blocks
                + w_bufs * 2 * tn_ * 4          # biases
                + 2 * tm * tn_ * oi             # out tile (double-buffered)
                + 8 * tm * tn_ * 4              # f32 intermediates
                + 2 * tm * D                    # bf16 copy of x
                + (2 << 20))                    # slack

    if _vmem_est(D, 1) <= budget or D % 128 != 0:
        tn = D                                  # weights fully resident
    else:
        tn = D
        blocks = D // 128
        for k in range(blocks, 0, -1):          # largest 128-aligned divisor that fits
            if blocks % k == 0 and _vmem_est(128 * k, 2) <= budget:
                tn = 128 * k
                break
        # TODO(synk): if even a (D, 128) weight block does not fit (huge D on
        # v7x), additionally tile the reduction dim with an accumulator.
    num_n = pl.cdiv(D, tn)                      # == D // tn by construction

    w_bufs = 1 if num_n == 1 else 2
    vmem_limit = int(min(max(_vmem_est(tn, w_bufs), 32 << 20), budget))

    invariant_w = (num_n == 1)

    def _w_spec(shape, imap):
        if invariant_w:
            return pl.BlockSpec(shape, imap, pipeline_mode=pl.Buffered(1))
        return pl.BlockSpec(shape, imap)

    kernel = functools.partial(_highway_kernel, tn=tn, mm_dtype=mm_dtype)

    return pl.pallas_call(
        kernel,
        out_shape=jax.ShapeDtypeStruct((B, D), out_dtype),
        grid_spec=pltpu.PrefetchScalarGridSpec(
            num_scalar_prefetch=0,
            grid=(num_m, num_n),
            in_specs=[
                pl.BlockSpec((tm, D), lambda i, j: (i, 0)),   # x (invariant over j)
                _w_spec((D, tn), lambda i, j: (0, j)),        # W_proj columns
                _w_spec((D, tn), lambda i, j: (0, j)),        # W_gate columns
                _w_spec((1, tn), lambda i, j: (0, j)),        # b_proj
                _w_spec((1, tn), lambda i, j: (0, j)),        # b_gate
            ],
            out_specs=pl.BlockSpec((tm, tn), lambda i, j: (i, j)),
        ),
        compiler_params=pltpu.CompilerParams(
            dimension_semantics=("parallel", "parallel"),
            vmem_limit_bytes=vmem_limit,
        ),
    )(x, w_proj, w_gate, b_proj.reshape(1, D), b_gate.reshape(1, D))


def highway_ref(x, w_proj, b_proj, w_gate, b_gate):
    gate = jax.nn.sigmoid(x @ w_gate + b_gate)
    proj = jax.nn.relu(x @ w_proj + b_proj)
    return proj * gate + (1.0 - gate) * x


if __name__ == "__main__":
    key = jax.random.PRNGKey(0)

    def make_inputs(B, D, k):
        kx, kwp, kbp, kwg, kbg = jax.random.split(k, 5)
        x = jax.random.normal(kx, (B, D), dtype=jnp.float32)
        bound = 1.0 / float(D) ** 0.5
        # Weights stored as (in, out) — already transposed vs torch's (out, in).
        w_proj = jax.random.uniform(kwp, (D, D), jnp.float32, -bound, bound)
        b_proj = jax.random.uniform(kbp, (D,), jnp.float32, -bound, bound)
        w_gate = jax.random.uniform(kwg, (D, D), jnp.float32, -bound, bound)
        b_gate = jax.random.uniform(kbg, (D,), jnp.float32, -bound, bound)
        return x, w_proj, b_proj, w_gate, b_gate

    k0, k1 = jax.random.split(key)

    # Exact-semantics check: f32 MXU operands, tight tolerance.
    args = make_inputs(8, 32, k0)
    out = jax.block_until_ready(highway(*args, matmul_dtype=jnp.float32))
    ref = highway_ref(*args)
    assert jnp.allclose(out, ref, atol=1e-5, rtol=1e-5), "mismatch (f32, B=8, D=32)"

    # Default path (bf16 MXU operands, f32 accumulation/epilogue), ragged
    # batch (exercises the masked last-tile write), lane-aligned D.
    args = make_inputs(20, 128, k1)
    out = jax.block_until_ready(highway(*args))
    ref = highway_ref(*args)
    assert jnp.allclose(out, ref, atol=3e-2, rtol=3e-2), "mismatch (bf16, B=20, D=128)"

    print("KERNEL_OK")
</pallas_src>

<mosaic_0001>
module attributes {stable_mosaic.version = 11 : i64} {
  func.func @_highway_kernel(%arg0: i32, %arg1: i32, %arg2: memref<8x32xf32, #tpu.memory_space<vmem>>, %arg3: memref<32x32xf32, #tpu.memory_space<vmem>>, %arg4: memref<32x32xf32, #tpu.memory_space<vmem>>, %arg5: memref<1x32xf32, #tpu.memory_space<vmem>>, %arg6: memref<1x32xf32, #tpu.memory_space<vmem>>, %arg7: memref<8x32xf32, #tpu.memory_space<vmem>>) attributes {dimension_semantics = [#tpu.dimension_semantics<parallel>, #tpu.dimension_semantics<parallel>], iteration_bounds = array<i64: 1, 1>, scalar_prefetch = 0 : i64, scratch_operands = 0 : i64, tpu.core_type = #tpu.core_type<tc>, window_params = [{transform_indices = @transform_0, window_bounds = array<i64: 8, 32>}, {pipeline_mode = #tpu.pipeline_mode<synchronous>, transform_indices = @transform_1, window_bounds = array<i64: 32, 32>}, {pipeline_mode = #tpu.pipeline_mode<synchronous>, transform_indices = @transform_2, window_bounds = array<i64: 32, 32>}, {pipeline_mode = #tpu.pipeline_mode<synchronous>, transform_indices = @transform_3, window_bounds = array<i64: 1, 32>}, {pipeline_mode = #tpu.pipeline_mode<synchronous>, transform_indices = @transform_4, window_bounds = array<i64: 1, 32>}, {transform_indices = @transform_5, window_bounds = array<i64: 8, 32>}]} {
    %c0 = arith.constant 0 : index
    %c0_0 = arith.constant 0 : index
    %0 = vector.load %arg2[%c0, %c0_0] : memref<8x32xf32, #tpu.memory_space<vmem>>, vector<8x32xf32>
    %c0_1 = arith.constant 0 : index
    %c0_2 = arith.constant 0 : index
    %1 = vector.load %arg3[%c0_1, %c0_2] : memref<32x32xf32, #tpu.memory_space<vmem>>, vector<32x32xf32>
    %c0_3 = arith.constant 0 : index
    %c0_4 = arith.constant 0 : index
    %2 = vector.load %arg4[%c0_3, %c0_4] : memref<32x32xf32, #tpu.memory_space<vmem>>, vector<32x32xf32>
    %cst = arith.constant dense<0.000000e+00> : vector<8x32xf32>
    %3 = tpu.matmul %0, %1, %cst {dimension_numbers = #tpu.dot_dimension_numbers<[1], [0], [0], [1], [0, 0, 1, 1], [], []>} : vector<8x32xf32>, vector<32x32xf32>, vector<8x32xf32> -> vector<8x32xf32>
    %c0_5 = arith.constant 0 : index
    %c0_6 = arith.constant 0 : index
    %4 = vector.load %arg5[%c0_5, %c0_6] : memref<1x32xf32, #tpu.memory_space<vmem>>, vector<1x32xf32>
    %5 = vector.broadcast %4 : vector<1x32xf32> to vector<8x32xf32>
    %6 = arith.addf %3, %5 : vector<8x32xf32>
    %cst_7 = arith.constant dense<0.000000e+00> : vector<8x32xf32>
    %7 = tpu.matmul %0, %2, %cst_7 {dimension_numbers = #tpu.dot_dimension_numbers<[1], [0], [0], [1], [0, 0, 1, 1], [], []>} : vector<8x32xf32>, vector<32x32xf32>, vector<8x32xf32> -> vector<8x32xf32>
    %c0_8 = arith.constant 0 : index
    %c0_9 = arith.constant 0 : index
    %8 = vector.load %arg6[%c0_8, %c0_9] : memref<1x32xf32, #tpu.memory_space<vmem>>, vector<1x32xf32>
    %9 = vector.broadcast %8 : vector<1x32xf32> to vector<8x32xf32>
    %10 = arith.addf %7, %9 : vector<8x32xf32>
    %cst_10 = arith.constant 0.000000e+00 : f32
    %11 = vector.broadcast %cst_10 : f32 to vector<8x32xf32>
    %12 = arith.maximumf %6, %11 : vector<8x32xf32>
    %13 = arith.negf %10 : vector<8x32xf32>
    %14 = math.exp %13 : vector<8x32xf32>
    %cst_11 = arith.constant 1.000000e+00 : f32
    %15 = vector.broadcast %cst_11 : f32 to vector<8x32xf32>
    %16 = arith.addf %15, %14 : vector<8x32xf32>
    %17 = arith.divf %15, %16 : vector<8x32xf32>
    %18 = arith.subf %12, %0 : vector<8x32xf32>
    %19 = arith.mulf %17, %18 : vector<8x32xf32>
    %20 = arith.addf %19, %0 : vector<8x32xf32>
    %c0_12 = arith.constant 0 : index
    %c0_13 = arith.constant 0 : index
    %21 = vector.load %arg7[%c0_12, %c0_13] : memref<8x32xf32, #tpu.memory_space<vmem>>, vector<8x32xf32>
    tpu.vector_store %arg7[%c0_12, %c0_13], %20 {strides = array<i32>} : memref<8x32xf32, #tpu.memory_space<vmem>>, vector<8x32xf32>,
    return
  }
  func.func @transform_0(%arg0: i32, %arg1: i32) -> (i32, i32) {
    %c0_i32 = arith.constant 0 : i32
    %c0_i32_0 = arith.constant 0 : i32
    return %arg0, %c0_i32 : i32, i32
  }
  func.func @transform_1(%arg0: i32, %arg1: i32) -> (i32, i32) {
    %c0_i32 = arith.constant 0 : i32
    %c0_i32_0 = arith.constant 0 : i32
    return %c0_i32, %arg1 : i32, i32
  }
  func.func @transform_2(%arg0: i32, %arg1: i32) -> (i32, i32) {
    %c0_i32 = arith.constant 0 : i32
    %c0_i32_0 = arith.constant 0 : i32
    return %c0_i32, %arg1 : i32, i32
  }
  func.func @transform_3(%arg0: i32, %arg1: i32) -> (i32, i32) {
    %c0_i32 = arith.constant 0 : i32
    %c0_i32_0 = arith.constant 0 : i32
    return %c0_i32, %arg1 : i32, i32
  }
  func.func @transform_4(%arg0: i32, %arg1: i32) -> (i32, i32) {
    %c0_i32 = arith.constant 0 : i32
    %c0_i32_0 = arith.constant 0 : i32
    return %c0_i32, %arg1 : i32, i32
  }
  func.func @transform_5(%arg0: i32, %arg1: i32) -> (i32, i32) {
    %c0_i32 = arith.constant 0 : i32
    return %arg0, %arg1 : i32, i32
  }
}

</mosaic_0001>

<bundles_post_ra>
// kernel: tpu_custom_call.1
= control target key start
LH: loop header
LB: loop body
LE: loop exit
PB: predicated region body
PF: predicated region fallthrough
CT: control target
= control target key end

     0   :  { %10 = vsyncpa [#allocation3], 0  ;;  %s343_s0 = inlined_call_operand.hbm [shape: f32[8,32], index: 0, kind: input, shape index: {}]   ;;  %s344_s1 = inlined_call_operand.hbm [shape: f32[32,32], index: 1, kind: input, shape index: {}]   ;;  %s345_s2 = inlined_call_operand.hbm [shape: f32[32,32], index: 2, kind: input, shape index: {}]   ;;  %s346_s3 = inlined_call_operand.vmem [shape: f32[1,32], index: 3, kind: input, shape index: {}]   ;;  %s347_s4 = inlined_call_operand.vmem [shape: f32[1,32], index: 4, kind: input, shape index: {}]   ;;  %s348_s5 = inlined_call_operand.hbm [shape: f32[8,32], index: 5, kind: output, shape index: {}]  }
   0x1   :  { %11 = vsyncpa [#allocation6], 0  ;;  %s28_s20 = sshll.u32 %s344_s1, 4  ;;  %s29_s20 = int_to_ptr.hbm [resolvable:$true] %s28_s20 }
   0x2   :  { %12 = vsyncpa [#allocation4], 0  ;;  %s286_s21 = smov [#allocation5]   ;;  %s18_s25 = sshll.u32 %s343_s0, 4  ;;  %s19_s25 = int_to_ptr.hbm [resolvable:$true] %s18_s25 }
   0x3   :  { %s30_s22 = sshll.u32 %s286_s21, 4  ;;  %s287_s26 = smov 128   ;;  %s31_s22 = int_to_ptr.vmem [resolvable:$true] %s30_s22 }
   0x4   :  { %s288_s27 = smov 8   ;;  %s289_s28 = smov [#allocation2]  }
   0x5   :  { %36 = dma.hbm_to_vmem [thread:$0]  %s29_s20, 512, %s31_s22, [#allocation6], %s287_s26, %s287_s26, %s288_s27  }
   0x6   :  { %s20_s29 = sshll.u32 %s289_s28, 4  ;;  %s41_s7 = sshll.u32 %s345_s2, 4  ;;  %s21_s29 = int_to_ptr.vmem [resolvable:$true] %s20_s29  ;;  %s42_s7 = int_to_ptr.hbm [resolvable:$true] %s41_s7 }
   0x7   :  { %23 = dma.hbm_to_vmem [thread:$0]  %s19_s25, 128, %s21_s29, [#allocation3]  }
   0x8   :  { %s290_s1 = smov [#allocation7]  }
   0x9   :  { %s43_s8 = sshll.u32 %s290_s1, 4  ;;  %s44_s8 = int_to_ptr.vmem [resolvable:$true] %s43_s8 }
   0xa   :  { %49 = dma.hbm_to_vmem [thread:$0]  %s42_s7, 512, %s44_s8, [#allocation6], %s287_s26, %s287_s26, %s288_s27  }
   0xb   :  { %280 = dma.done.wait [#allocation3], 128  }
   0xc   :  { %281 = vsyncadd [#allocation3], 4294967168 }
   0xd   :  { %282 = dma.done.wait [#allocation6], 1024  }
   0xe   :  { %283 = vsyncadd [#allocation6], 4294966272  ;;  %v74_v0 = vld [vmem:[#allocation7 + $0x18] sm:$0xff]  ;;  %v73_v1 = vld [vmem:[#allocation7 + $0x10] sm:$0xff]  ;;  %vm79_vm0 = vcmask 261120   ;;  %s158_s13 = sshll.u32 %s348_s5, 4  ;;  %s159_s13 = int_to_ptr.hbm [resolvable:$true] %s158_s13 }
   0xf   :  { %119 = vmatpush.msra.mxu1 %v74_v0  ;;  %v70_v2 = vld [vmem:[#allocation5 + $0x18] sm:$0xff]  ;;  %v72_v3 = vld [vmem:[#allocation7 + $0x8] sm:$0xff]  ;;  %v69_v4 = vld [vmem:[#allocation5 + $0x10] sm:$0xff] }
  0x10   :  { %95 = vmatpush.msra.mxu0 %v70_v2  ;;  %v68_v5 = vld [vmem:[#allocation5 + $0x8] sm:$0xff]  ;;  %v71_v6 = vld [vmem:[#allocation7] sm:$0xff]  ;;  %v66_v7 = vld [vmem:[#allocation2] sm:$0xff] }
  0x11   :  { %120 = vmatpush.msra.mxu1 %v73_v1  ;;  %v67_v8 = vld [vmem:[#allocation5] sm:$0xff]  ;;  %v178_v9 = vld [vmem:[%s347_s4] ss:$0 sm:$0xff]  ;;  %s291_s4 = smov [#allocation8]  }
  0x12   :  { %96 = vmatpush.msra.mxu0 %v69_v4  ;;  %v179_v15 = vld [vmem:[%s346_s3] ss:$0 sm:$0xff]  ;;  %s156_s3 = sshll.u32 %s291_s4, 4  ;;  %s157_s3 = int_to_ptr.vmem [resolvable:$true] %s156_s3 }
  0x13   :  { %121 = vmatpush.msra.mxu1 %v72_v3 }
  0x14   :  { %97 = vmatpush.msra.mxu0 %v68_v5 }
  0x15   :  { %122 = vmatpush.msra.mxu1 %v71_v6 }
  0x16   :  { %170 = vmatmul.msk.f32.vlgmr.msra.gmra.mxu1 %vm79_vm0, %v66_v7  ;;  %98 = vmatpush.msra.mxu0 %v67_v8 }
  0x17   :  { %169 = vmatmul.msk.f32.vlgmr.msra.gmra.mxu0 %vm79_vm0, %v66_v7 }
  0x93   :  { %v124_v10 = vpop.f32.mrf.mxu1 }
  0x94   :  { %v125_v11 = vadd.f32 %v178_v9, %v124_v10  ;;  %v100_v16 = vpop.f32.mrf.mxu0 }
  0x95   :  { %v101_v17 = vadd.f32 %v179_v15, %v100_v16 }
  0x96   :  { %v171_v12 = vmul.f32 -1.442695, %v125_v11 }
  0x97   :  { %v127_v21 = vmax.f32 %v101_v17, 0.0 }
  0x98   :  { %180 = vpow2.f32 %v171_v12 }
  0x99   :  { %v147_v26 = vsub.f32 %v127_v21, %v66_v7 }
  0x9e   :  { %v181_v13 = vpop.eup %180 }
  0x9f   :  { %v131_v14 = vadd.f32 1.0, %v181_v13 }
  0xa1   :  { %182 = vrcp.f32 %v131_v14  ;;  %v143_v22 = vand.u32 2147483648, %v131_v14  ;;  %v141_v24 = vand.u32 2147483647, %v131_v14  ;;  %vm137_vm2 = vweird.f32 %v131_v14 }
  0xa3   :  { %v144_v27 = vor.u32 1.1754944e-38, %v143_v22  ;;  %vm142_vm4 = vcmp.eq.f32.partialorder %v141_v24, 8.507059e+37 }
  0xa7   :  { %v183_v18 = vpop.eup %182 }
  0xa8   :  { %v133_v19 = vmul.f32 %v183_v18, %v131_v14  ;;  %vm138_vm1 = vweird.f32 %v183_v18 }
  0xa9   :  { %vm139_vm3 = vmor %vm137_vm2, %vm138_vm1 }
  0xaa   :  { %v134_v20 = vsub.f32 1.0, %v133_v19 }
  0xac   :  { %v135_v23 = vmul.f32 %v183_v18, %v134_v20 }
  0xae   :  { %v136_v25 = vadd.f32 %v183_v18, %v135_v23 }
  0xb0   :  { %v140_v28 = vsel %vm139_vm3, %v183_v18, %v136_v25 }
  0xb1   :  { %v145_v29 = vsel %vm142_vm4, %v144_v27, %v140_v28 }
  0xb2   :  { %v148_v30 = vmul.f32 %v147_v26, %v145_v29 }
  0xb4   :  { %v149_v31 = vadd.f32 %v148_v30, %v66_v7 }
  0xb6   :  { %150 = vst.msk [vmem:[#allocation8] sm:$0xff] %vm79_vm0, %v149_v31 }
  0xb7   :  { %161 = dma.vmem_to_hbm [thread:$0]  %s157_s3, 128, %s159_s13, [#allocation4]  }
  0xb8   :  { %284 = dma.done.wait [#allocation4], 128  }
  0xb9   :  { %285 = vsyncadd [#allocation4], 4294967168 }
  0xba   :  { %166 = vsyncpa [#allocation3], 1 }
  0xbb   :  { %167 = vsyncpa [#allocation6], 1 }
  0xbc   :  { %168 = vsyncpa [#allocation4], 1 }

</bundles_post_ra>
